<compile_context>
chip_gen: v6e
topology: v6e:2x2x1
jax: 0.10.0
libtpu: 0.0.40
codegen_flags: <defaults>
</compile_context>

<pallas_src>
import functools

import jax
import jax.numpy as jnp
from jax.experimental import pallas as pl
from jax.experimental.pallas import tpu as pltpu


def _biaffine_kernel(x_ref,
                     w1_ref, b1_ref, w2s_ref, b2s_ref, w2e_ref, b2e_ref,
                     kdd_ref, kd1_ref, k1d_ref, k11_ref,
                     out_ref,
                     start_s, end_s, ebias_s,
                     *, dim, target_dim, tile_x):
    cdt = w1_ref.dtype  # compute dtype for MXU operands (bf16 or f32)

    # ---- once per batch element: both 2-layer MLPs over the full sequence ---
    @pl.when(pl.program_id(1) == 0)
    def _():
        x = x_ref[0].astype(cdt)                                     # (S, D)
        # fused first layer: x @ [W1s | W1e]  -> (S, 2D), ReLU
        h = jnp.dot(x, w1_ref[...], preferred_element_type=jnp.float32)
        h = jnp.maximum(h + b1_ref[...], 0.0)                        # (S, 2D)
        h_s = h[:, :dim].astype(cdt)
        h_e = h[:, dim:].astype(cdt)
        start = (jnp.dot(h_s, w2s_ref[...],
                         preferred_element_type=jnp.float32) + b2s_ref[...])
        end = (jnp.dot(h_e, w2e_ref[...],
                       preferred_element_type=jnp.float32) + b2e_ref[...])
        start_s[...] = start.astype(cdt)                             # (S, D)
        end_s[...] = end.astype(cdt)                                 # (S, D)
        # end-side bias rows: ebias[o, y] = K[D, o, :D] . end[y] + K[D, o, D]
        eb = jax.lax.dot_general(k1d_ref[...], end.astype(cdt),
                                 (((1,), (1,)), ((), ())),
                                 preferred_element_type=jnp.float32)  # (O, S)
        ebias_s[...] = eb + k11_ref[...]

    # ---- per output row tile -------------------------------------------------
    it = pl.program_id(1)
    row0 = pl.multiple_of(it * tile_x, tile_x)
    start_t = start_s[pl.ds(row0, tile_x), :]                        # (tx, D)
    end_all = end_s[...]                                             # (S, D)
    eb_all = ebias_s[...]                                            # (O, S)

    # start-side bias: sbias[x, o] = start[x] . K[:D, o, D]
    sbias = jnp.dot(start_t, kd1_ref[...],
                    preferred_element_type=jnp.float32)              # (tx, O)

    for o in range(target_dim):
        tmp = jnp.dot(start_t, kdd_ref[o],
                      preferred_element_type=jnp.float32)            # (tx, D)
        so = jax.lax.dot_general(tmp.astype(cdt), end_all,
                                 (((1,), (1,)), ((), ())),
                                 preferred_element_type=jnp.float32)  # (tx, S)
        out_ref[0, o] = (so + sbias[:, o:o + 1]
                         + eb_all[o:o + 1, :]).astype(out_ref.dtype)


def biaffine_forward(x, params, *, target_dim,
                     compute_dtype=jnp.bfloat16, tile_x=None):
    """x: (B, S, D) float32. Returns (B, S, S, target_dim) float32."""
    B, S, D = x.shape
    O = target_dim

    if tile_x is None:
        tile_x = S
        for t in (512, 256, 128):
            if S % t == 0:
                tile_x = t
                break
    assert S % tile_x == 0
    n_tiles = S // tile_x

    cdt = compute_dtype
    K = params['kernel']                                             # (D+1, O, D+1)
    kdd = jnp.transpose(K[:D, :, :D], (1, 0, 2)).astype(cdt)         # (O, D, D)
    kd1 = K[:D, :, D].astype(cdt)                                    # (D, O)
    k1d = K[D, :, :D].astype(cdt)                                    # (O, D)
    k11 = K[D, :, D].reshape(O, 1)                                   # (O, 1) f32

    w1cat = jnp.concatenate([params['w1s'], params['w1e']], axis=1).astype(cdt)
    b1cat = jnp.concatenate([params['b1s'], params['b1e']], axis=1)  # f32
    w2s = params['w2s'].astype(cdt)
    w2e = params['w2e'].astype(cdt)
    b2s, b2e = params['b2s'], params['b2e']                          # f32

    def full(a):
        return pl.BlockSpec(a.shape, lambda b, i, _n=a.ndim: (0,) * _n)

    kernel = functools.partial(_biaffine_kernel, dim=D,
                               target_dim=O, tile_x=tile_x)

    out = pl.pallas_call(
        kernel,
        out_shape=jax.ShapeDtypeStruct((B, O, S, S), jnp.float32),
        grid_spec=pltpu.PrefetchScalarGridSpec(
            num_scalar_prefetch=0,
            grid=(B, n_tiles),
            in_specs=[
                pl.BlockSpec((1, S, D), lambda b, i: (b, 0, 0)),     # x (full seq)
                full(w1cat), full(b1cat),                            # fused layer-1
                full(w2s), full(b2s),                                # start layer-2
                full(w2e), full(b2e),                                # end layer-2
                full(kdd), full(kd1), full(k1d), full(k11),          # split biaffine K
            ],
            out_specs=pl.BlockSpec((1, O, tile_x, S),
                                   lambda b, i: (b, 0, i, 0)),
            scratch_shapes=[
                pltpu.VMEM((S, D), cdt),          # start features
                pltpu.VMEM((S, D), cdt),          # end features
                pltpu.VMEM((O, S), jnp.float32),  # end-side bias rows (+const)
            ],
        ),
        compiler_params=pltpu.CompilerParams(
            dimension_semantics=("parallel", "arbitrary"),
            vmem_limit_bytes=64 * 1024 * 1024),
    )(x, w1cat, b1cat, w2s, b2s, w2e, b2e, kdd, kd1, k1d, k11)

    # back to the reference 'bxyo' layout (XLA fuses this downstream).
    return jnp.transpose(out, (0, 2, 3, 1))


def init_params(key, dim, target_dim):
    ks = jax.random.split(key, 9)
    bound = 1.0 / jnp.sqrt(dim)
    u = lambda k, shape: jax.random.uniform(k, shape, jnp.float32, -bound, bound)
    return {
        # weights stored as (in, out) so the forward does x @ W + b,
        # matching PyTorch's x @ W.T with W of shape (out, in).
        'w1s': u(ks[0], (dim, dim)), 'b1s': u(ks[1], (1, dim)),
        'w2s': u(ks[2], (dim, dim)), 'b2s': u(ks[3], (1, dim)),
        'w1e': u(ks[4], (dim, dim)), 'b1e': u(ks[5], (1, dim)),
        'w2e': u(ks[6], (dim, dim)), 'b2e': u(ks[7], (1, dim)),
        'kernel': jax.random.normal(ks[8], (dim + 1, target_dim, dim + 1),
                                    jnp.float32),
    }


def reference_forward(x, params):
    relu = lambda v: jnp.maximum(v, 0.0)
    start = relu(x @ params['w1s'] + params['b1s'][0]) @ params['w2s'] \
        + params['b2s'][0]
    end = relu(x @ params['w1e'] + params['b1e'][0]) @ params['w2e'] \
        + params['b2e'][0]
    ones = jnp.ones_like(start[..., :1])
    bs = jnp.concatenate([start, ones], axis=-1)
    be = jnp.concatenate([end, ones], axis=-1)
    return jnp.einsum('bxi,ioj,byj->bxyo', bs, params['kernel'], be)


if __name__ == "__main__":
    B, S, DIM, TARGET_DIM = 2, 8, 32, 4

    key = jax.random.PRNGKey(0)
    k_in, k_par = jax.random.split(key)
    x = jax.random.normal(k_in, (B, S, DIM), jnp.float32)
    params = init_params(k_par, DIM, TARGET_DIM)

    ref = reference_forward(x, params)

    # exact-math path (f32 MXU operands): tight check of the restructuring.
    out_f32 = biaffine_forward(x, params, target_dim=TARGET_DIM,
                               compute_dtype=jnp.float32)
    out_f32 = jax.block_until_ready(out_f32)
    assert out_f32.shape == (B, S, S, TARGET_DIM), out_f32.shape
    assert jnp.allclose(out_f32, ref, atol=1e-3, rtol=1e-3), \
        float(jnp.max(jnp.abs(out_f32 - ref)))

    # fast path (bf16 MXU operands, f32 accumulation): loose check.
    out_bf16 = biaffine_forward(x, params, target_dim=TARGET_DIM,
                                compute_dtype=jnp.bfloat16)
    out_bf16 = jax.block_until_ready(out_bf16)
    rel = jnp.linalg.norm(out_bf16 - ref) / (jnp.linalg.norm(ref) + 1e-9)
    assert float(rel) < 5e-2, float(rel)

    print("KERNEL_OK")
</pallas_src>

<mosaic_0001>
module attributes {stable_mosaic.version = 11 : i64} {
  func.func @_biaffine_kernel(%arg0: i32, %arg1: i32, %arg2: memref<1x8x32xf32, #tpu.memory_space<vmem>>, %arg3: memref<32x64xf32, #tpu.memory_space<vmem>>, %arg4: memref<1x64xf32, #tpu.memory_space<vmem>>, %arg5: memref<32x32xf32, #tpu.memory_space<vmem>>, %arg6: memref<1x32xf32, #tpu.memory_space<vmem>>, %arg7: memref<32x32xf32, #tpu.memory_space<vmem>>, %arg8: memref<1x32xf32, #tpu.memory_space<vmem>>, %arg9: memref<4x32x32xf32, #tpu.memory_space<vmem>>, %arg10: memref<32x4xf32, #tpu.memory_space<vmem>>, %arg11: memref<4x32xf32, #tpu.memory_space<vmem>>, %arg12: memref<4x1xf32, #tpu.memory_space<vmem>>, %arg13: memref<1x4x8x8xf32, #tpu.memory_space<vmem>>, %arg14: memref<8x32xf32, #tpu.memory_space<vmem>>, %arg15: memref<8x32xf32, #tpu.memory_space<vmem>>, %arg16: memref<4x8xf32, #tpu.memory_space<vmem>>) attributes {dimension_semantics = [#tpu.dimension_semantics<parallel>, #tpu.dimension_semantics<arbitrary>], iteration_bounds = array<i64: 2, 1>, scalar_prefetch = 0 : i64, scratch_operands = 3 : i64, tpu.core_type = #tpu.core_type<tc>, window_params = [{transform_indices = @transform_0, window_bounds = array<i64: 1, 8, 32>}, {pipeline_mode = #tpu.pipeline_mode<synchronous>, transform_indices = @transform_1, window_bounds = array<i64: 32, 64>}, {pipeline_mode = #tpu.pipeline_mode<synchronous>, transform_indices = @transform_2, window_bounds = array<i64: 1, 64>}, {pipeline_mode = #tpu.pipeline_mode<synchronous>, transform_indices = @transform_3, window_bounds = array<i64: 32, 32>}, {pipeline_mode = #tpu.pipeline_mode<synchronous>, transform_indices = @transform_4, window_bounds = array<i64: 1, 32>}, {pipeline_mode = #tpu.pipeline_mode<synchronous>, transform_indices = @transform_5, window_bounds = array<i64: 32, 32>}, {pipeline_mode = #tpu.pipeline_mode<synchronous>, transform_indices = @transform_6, window_bounds = array<i64: 1, 32>}, {pipeline_mode = #tpu.pipeline_mode<synchronous>, transform_indices = @transform_7, window_bounds = array<i64: 4, 32, 32>}, {pipeline_mode = #tpu.pipeline_mode<synchronous>, transform_indices = @transform_8, window_bounds = array<i64: 32, 4>}, {pipeline_mode = #tpu.pipeline_mode<synchronous>, transform_indices = @transform_9, window_bounds = array<i64: 4, 32>}, {pipeline_mode = #tpu.pipeline_mode<synchronous>, transform_indices = @transform_10, window_bounds = array<i64: 4, 1>}, {transform_indices = @transform_11, window_bounds = array<i64: 1, 4, 8, 8>}]} {
    %c0_i32 = arith.constant 0 : i32
    %0 = arith.cmpi eq, %arg1, %c0_i32 : i32
    %1 = arith.extui %0 : i1 to i32
    %c0_i32_0 = arith.constant 0 : i32
    %2 = arith.cmpi ne, %1, %c0_i32_0 : i32
    scf.if %2 {
      %c0_40 = arith.constant 0 : index
      %c0_41 = arith.constant 0 : index
      %c0_42 = arith.constant 0 : index
      %63 = vector.load %arg2[%c0_40, %c0_41, %c0_42] : memref<1x8x32xf32, #tpu.memory_space<vmem>>, vector<1x8x32xf32>
      %64 = vector.shape_cast %63 : vector<1x8x32xf32> to vector<8x32xf32>
      %c0_43 = arith.constant 0 : index
      %c0_44 = arith.constant 0 : index
      %65 = vector.load %arg3[%c0_43, %c0_44] : memref<32x64xf32, #tpu.memory_space<vmem>>, vector<32x64xf32>
      %cst_45 = arith.constant dense<0.000000e+00> : vector<8x64xf32>
      %66 = tpu.matmul %64, %65, %cst_45 {dimension_numbers = #tpu.dot_dimension_numbers<[1], [0], [0], [1], [0, 0, 1, 1], [], []>} : vector<8x32xf32>, vector<32x64xf32>, vector<8x64xf32> -> vector<8x64xf32>
      %c0_46 = arith.constant 0 : index
      %c0_47 = arith.constant 0 : index
      %67 = vector.load %arg4[%c0_46, %c0_47] : memref<1x64xf32, #tpu.memory_space<vmem>>, vector<1x64xf32>
      %68 = vector.broadcast %67 : vector<1x64xf32> to vector<8x64xf32>
      %69 = arith.addf %66, %68 : vector<8x64xf32>
      %cst_48 = arith.constant 0.000000e+00 : f32
      %70 = vector.broadcast %cst_48 : f32 to vector<8x64xf32>
      %71 = arith.maximumf %69, %70 : vector<8x64xf32>
      %72 = vector.extract_strided_slice %71 {offsets = [0, 0], sizes = [8, 32], strides = [1, 1]} : vector<8x64xf32> to vector<8x32xf32>
      %73 = vector.extract_strided_slice %71 {offsets = [0, 32], sizes = [8, 32], strides = [1, 1]} : vector<8x64xf32> to vector<8x32xf32>
      %c0_49 = arith.constant 0 : index
      %c0_50 = arith.constant 0 : index
      %74 = vector.load %arg5[%c0_49, %c0_50] : memref<32x32xf32, #tpu.memory_space<vmem>>, vector<32x32xf32>
      %cst_51 = arith.constant dense<0.000000e+00> : vector<8x32xf32>
      %75 = tpu.matmul %72, %74, %cst_51 {dimension_numbers = #tpu.dot_dimension_numbers<[1], [0], [0], [1], [0, 0, 1, 1], [], []>} : vector<8x32xf32>, vector<32x32xf32>, vector<8x32xf32> -> vector<8x32xf32>
      %c0_52 = arith.constant 0 : index
      %c0_53 = arith.constant 0 : index
      %76 = vector.load %arg6[%c0_52, %c0_53] : memref<1x32xf32, #tpu.memory_space<vmem>>, vector<1x32xf32>
      %77 = vector.broadcast %76 : vector<1x32xf32> to vector<8x32xf32>
      %78 = arith.addf %75, %77 : vector<8x32xf32>
      %c0_54 = arith.constant 0 : index
      %c0_55 = arith.constant 0 : index
      %79 = vector.load %arg7[%c0_54, %c0_55] : memref<32x32xf32, #tpu.memory_space<vmem>>, vector<32x32xf32>
      %cst_56 = arith.constant dense<0.000000e+00> : vector<8x32xf32>
      %80 = tpu.matmul %73, %79, %cst_56 {dimension_numbers = #tpu.dot_dimension_numbers<[1], [0], [0], [1], [0, 0, 1, 1], [], []>} : vector<8x32xf32>, vector<32x32xf32>, vector<8x32xf32> -> vector<8x32xf32>
      %c0_57 = arith.constant 0 : index
      %c0_58 = arith.constant 0 : index
      %81 = vector.load %arg8[%c0_57, %c0_58] : memref<1x32xf32, #tpu.memory_space<vmem>>, vector<1x32xf32>
      %82 = vector.broadcast %81 : vector<1x32xf32> to vector<8x32xf32>
      %83 = arith.addf %80, %82 : vector<8x32xf32>
      %c0_59 = arith.constant 0 : index
      %c0_60 = arith.constant 0 : index
      %84 = vector.load %arg14[%c0_59, %c0_60] : memref<8x32xf32, #tpu.memory_space<vmem>>, vector<8x32xf32>
      tpu.vector_store %arg14[%c0_59, %c0_60], %78 {strides = array<i32>} : memref<8x32xf32, #tpu.memory_space<vmem>>, vector<8x32xf32>,
      %c0_61 = arith.constant 0 : index
      %c0_62 = arith.constant 0 : index
      %85 = vector.load %arg15[%c0_61, %c0_62] : memref<8x32xf32, #tpu.memory_space<vmem>>, vector<8x32xf32>
      tpu.vector_store %arg15[%c0_61, %c0_62], %83 {strides = array<i32>} : memref<8x32xf32, #tpu.memory_space<vmem>>, vector<8x32xf32>,
      %c0_63 = arith.constant 0 : index
      %c0_64 = arith.constant 0 : index
      %86 = vector.load %arg11[%c0_63, %c0_64] : memref<4x32xf32, #tpu.memory_space<vmem>>, vector<4x32xf32>
      %cst_65 = arith.constant dense<0.000000e+00> : vector<4x8xf32>
      %87 = tpu.matmul %86, %83, %cst_65 {dimension_numbers = #tpu.dot_dimension_numbers<[1], [1], [0], [0], [0, 0, 1, 0], [], []>} : vector<4x32xf32>, vector<8x32xf32>, vector<4x8xf32> -> vector<4x8xf32>
      %c0_66 = arith.constant 0 : index
      %c0_67 = arith.constant 0 : index
      %88 = vector.load %arg12[%c0_66, %c0_67] : memref<4x1xf32, #tpu.memory_space<vmem>>, vector<4x1xf32>
      %89 = vector.broadcast %88 : vector<4x1xf32> to vector<4x8xf32>
      %90 = arith.addf %87, %89 : vector<4x8xf32>
      %c0_68 = arith.constant 0 : index
      %c0_69 = arith.constant 0 : index
      %91 = vector.load %arg16[%c0_68, %c0_69] : memref<4x8xf32, #tpu.memory_space<vmem>>, vector<4x8xf32>
      tpu.vector_store %arg16[%c0_68, %c0_69], %90 {strides = array<i32>} : memref<4x8xf32, #tpu.memory_space<vmem>>, vector<4x8xf32>,
    } else {
    }
    %c8_i32 = arith.constant 8 : i32
    %3 = arith.muli %arg1, %c8_i32 : i32
    %4 = tpu.assume_multiple %3, 8 : i32
    %5 = arith.index_cast %4 : i32 to index
    %c0 = arith.constant 0 : index
    %6 = vector.load %arg14[%5, %c0] : memref<8x32xf32, #tpu.memory_space<vmem>>, vector<8x32xf32>
    %c0_1 = arith.constant 0 : index
    %c0_2 = arith.constant 0 : index
    %7 = vector.load %arg15[%c0_1, %c0_2] : memref<8x32xf32, #tpu.memory_space<vmem>>, vector<8x32xf32>
    %c0_3 = arith.constant 0 : index
    %c0_4 = arith.constant 0 : index
    %8 = vector.load %arg16[%c0_3, %c0_4] : memref<4x8xf32, #tpu.memory_space<vmem>>, vector<4x8xf32>
    %c0_5 = arith.constant 0 : index
    %c0_6 = arith.constant 0 : index
    %9 = vector.load %arg10[%c0_5, %c0_6] : memref<32x4xf32, #tpu.memory_space<vmem>>, vector<32x4xf32>
    %cst = arith.constant dense<0.000000e+00> : vector<8x4xf32>
    %10 = tpu.matmul %6, %9, %cst {dimension_numbers = #tpu.dot_dimension_numbers<[1], [0], [0], [1], [0, 0, 1, 1], [], []>} : vector<8x32xf32>, vector<32x4xf32>, vector<8x4xf32> -> vector<8x4xf32>
    %c0_7 = arith.constant 0 : index
    %c0_8 = arith.constant 0 : index
    %c0_9 = arith.constant 0 : index
    %11 = vector.load %arg9[%c0_7, %c0_8, %c0_9] : memref<4x32x32xf32, #tpu.memory_space<vmem>>, vector<1x32x32xf32>
    %12 = vector.shape_cast %11 : vector<1x32x32xf32> to vector<32x32xf32>
    %cst_10 = arith.constant dense<0.000000e+00> : vector<8x32xf32>
    %13 = tpu.matmul %6, %12, %cst_10 {dimension_numbers = #tpu.dot_dimension_numbers<[1], [0], [0], [1], [0, 0, 1, 1], [], []>} : vector<8x32xf32>, vector<32x32xf32>, vector<8x32xf32> -> vector<8x32xf32>
    %cst_11 = arith.constant dense<0.000000e+00> : vector<8x8xf32>
    %14 = tpu.matmul %13, %7, %cst_11 {dimension_numbers = #tpu.dot_dimension_numbers<[1], [1], [0], [0], [0, 0, 1, 0], [], []>} : vector<8x32xf32>, vector<8x32xf32>, vector<8x8xf32> -> vector<8x8xf32>
    %15 = vector.extract_strided_slice %10 {offsets = [0, 0], sizes = [8, 1], strides = [1, 1]} : vector<8x4xf32> to vector<8x1xf32>
    %16 = vector.broadcast %15 : vector<8x1xf32> to vector<8x8xf32>
    %17 = arith.addf %14, %16 : vector<8x8xf32>
    %18 = vector.extract_strided_slice %8 {offsets = [0, 0], sizes = [1, 8], strides = [1, 1]} : vector<4x8xf32> to vector<1x8xf32>
    %19 = vector.broadcast %18 : vector<1x8xf32> to vector<8x8xf32>
    %20 = arith.addf %17, %19 : vector<8x8xf32>
    %c0_12 = arith.constant 0 : index
    %c0_13 = arith.constant 0 : index
    %c0_14 = arith.constant 0 : index
    %c0_15 = arith.constant 0 : index
    %21 = vector.load %arg13[%c0_12, %c0_13, %c0_14, %c0_15] : memref<1x4x8x8xf32, #tpu.memory_space<vmem>>, vector<1x1x8x8xf32>
    %22 = vector.shape_cast %21 : vector<1x1x8x8xf32> to vector<8x8xf32>
    %23 = vector.shape_cast %20 : vector<8x8xf32> to vector<1x1x8x8xf32>
    tpu.vector_store %arg13[%c0_12, %c0_13, %c0_14, %c0_15], %23 {strides = array<i32>} : memref<1x4x8x8xf32, #tpu.memory_space<vmem>>, vector<1x1x8x8xf32>,
    %c1 = arith.constant 1 : index
    %c0_16 = arith.constant 0 : index
    %c0_17 = arith.constant 0 : index
    %24 = vector.load %arg9[%c1, %c0_16, %c0_17] : memref<4x32x32xf32, #tpu.memory_space<vmem>>, vector<1x32x32xf32>
    %25 = vector.shape_cast %24 : vector<1x32x32xf32> to vector<32x32xf32>
    %cst_18 = arith.constant dense<0.000000e+00> : vector<8x32xf32>
    %26 = tpu.matmul %6, %25, %cst_18 {dimension_numbers = #tpu.dot_dimension_numbers<[1], [0], [0], [1], [0, 0, 1, 1], [], []>} : vector<8x32xf32>, vector<32x32xf32>, vector<8x32xf32> -> vector<8x32xf32>
    %cst_19 = arith.constant dense<0.000000e+00> : vector<8x8xf32>
    %27 = tpu.matmul %26, %7, %cst_19 {dimension_numbers = #tpu.dot_dimension_numbers<[1], [1], [0], [0], [0, 0, 1, 0], [], []>} : vector<8x32xf32>, vector<8x32xf32>, vector<8x8xf32> -> vector<8x8xf32>
    %28 = vector.extract_strided_slice %10 {offsets = [0, 1], sizes = [8, 1], strides = [1, 1]} : vector<8x4xf32> to vector<8x1xf32>
    %29 = vector.broadcast %28 : vector<8x1xf32> to vector<8x8xf32>
    %30 = arith.addf %27, %29 : vector<8x8xf32>
    %31 = vector.extract_strided_slice %8 {offsets = [1, 0], sizes = [1, 8], strides = [1, 1]} : vector<4x8xf32> to vector<1x8xf32>
    %32 = vector.broadcast %31 : vector<1x8xf32> to vector<8x8xf32>
    %33 = arith.addf %30, %32 : vector<8x8xf32>
    %c0_20 = arith.constant 0 : index
    %c1_21 = arith.constant 1 : index
    %c0_22 = arith.constant 0 : index
    %c0_23 = arith.constant 0 : index
    %34 = vector.load %arg13[%c0_20, %c1_21, %c0_22, %c0_23] : memref<1x4x8x8xf32, #tpu.memory_space<vmem>>, vector<1x1x8x8xf32>
    %35 = vector.shape_cast %34 : vector<1x1x8x8xf32> to vector<8x8xf32>
    %36 = vector.shape_cast %33 : vector<8x8xf32> to vector<1x1x8x8xf32>
    tpu.vector_store %arg13[%c0_20, %c1_21, %c0_22, %c0_23], %36 {strides = array<i32>} : memref<1x4x8x8xf32, #tpu.memory_space<vmem>>, vector<1x1x8x8xf32>,
    %c2 = arith.constant 2 : index
    %c0_24 = arith.constant 0 : index
    %c0_25 = arith.constant 0 : index
    %37 = vector.load %arg9[%c2, %c0_24, %c0_25] : memref<4x32x32xf32, #tpu.memory_space<vmem>>, vector<1x32x32xf32>
    %38 = vector.shape_cast %37 : vector<1x32x32xf32> to vector<32x32xf32>
    %cst_26 = arith.constant dense<0.000000e+00> : vector<8x32xf32>
    %39 = tpu.matmul %6, %38, %cst_26 {dimension_numbers = #tpu.dot_dimension_numbers<[1], [0], [0], [1], [0, 0, 1, 1], [], []>} : vector<8x32xf32>, vector<32x32xf32>, vector<8x32xf32> -> vector<8x32xf32>
    %cst_27 = arith.constant dense<0.000000e+00> : vector<8x8xf32>
    %40 = tpu.matmul %39, %7, %cst_27 {dimension_numbers = #tpu.dot_dimension_numbers<[1], [1], [0], [0], [0, 0, 1, 0], [], []>} : vector<8x32xf32>, vector<8x32xf32>, vector<8x8xf32> -> vector<8x8xf32>
    %41 = vector.extract_strided_slice %10 {offsets = [0, 2], sizes = [8, 1], strides = [1, 1]} : vector<8x4xf32> to vector<8x1xf32>
    %42 = vector.broadcast %41 : vector<8x1xf32> to vector<8x8xf32>
    %43 = arith.addf %40, %42 : vector<8x8xf32>
    %44 = vector.extract_strided_slice %8 {offsets = [2, 0], sizes = [1, 8], strides = [1, 1]} : vector<4x8xf32> to vector<1x8xf32>
    %45 = vector.broadcast %44 : vector<1x8xf32> to vector<8x8xf32>
    %46 = arith.addf %43, %45 : vector<8x8xf32>
    %c0_28 = arith.constant 0 : index
    %c2_29 = arith.constant 2 : index
    %c0_30 = arith.constant 0 : index
    %c0_31 = arith.constant 0 : index
    %47 = vector.load %arg13[%c0_28, %c2_29, %c0_30, %c0_31] : memref<1x4x8x8xf32, #tpu.memory_space<vmem>>, vector<1x1x8x8xf32>
    %48 = vector.shape_cast %47 : vector<1x1x8x8xf32> to vector<8x8xf32>
    %49 = vector.shape_cast %46 : vector<8x8xf32> to vector<1x1x8x8xf32>
    tpu.vector_store %arg13[%c0_28, %c2_29, %c0_30, %c0_31], %49 {strides = array<i32>} : memref<1x4x8x8xf32, #tpu.memory_space<vmem>>, vector<1x1x8x8xf32>,
    %c3 = arith.constant 3 : index
    %c0_32 = arith.constant 0 : index
    %c0_33 = arith.constant 0 : index
    %50 = vector.load %arg9[%c3, %c0_32, %c0_33] : memref<4x32x32xf32, #tpu.memory_space<vmem>>, vector<1x32x32xf32>
    %51 = vector.shape_cast %50 : vector<1x32x32xf32> to vector<32x32xf32>
    %cst_34 = arith.constant dense<0.000000e+00> : vector<8x32xf32>
    %52 = tpu.matmul %6, %51, %cst_34 {dimension_numbers = #tpu.dot_dimension_numbers<[1], [0], [0], [1], [0, 0, 1, 1], [], []>} : vector<8x32xf32>, vector<32x32xf32>, vector<8x32xf32> -> vector<8x32xf32>
    %cst_35 = arith.constant dense<0.000000e+00> : vector<8x8xf32>
    %53 = tpu.matmul %52, %7, %cst_35 {dimension_numbers = #tpu.dot_dimension_numbers<[1], [1], [0], [0], [0, 0, 1, 0], [], []>} : vector<8x32xf32>, vector<8x32xf32>, vector<8x8xf32> -> vector<8x8xf32>
    %54 = vector.extract_strided_slice %10 {offsets = [0, 3], sizes = [8, 1], strides = [1, 1]} : vector<8x4xf32> to vector<8x1xf32>
    %55 = vector.broadcast %54 : vector<8x1xf32> to vector<8x8xf32>
    %56 = arith.addf %53, %55 : vector<8x8xf32>
    %57 = vector.extract_strided_slice %8 {offsets = [3, 0], sizes = [1, 8], strides = [1, 1]} : vector<4x8xf32> to vector<1x8xf32>
    %58 = vector.broadcast %57 : vector<1x8xf32> to vector<8x8xf32>
    %59 = arith.addf %56, %58 : vector<8x8xf32>
    %c0_36 = arith.constant 0 : index
    %c3_37 = arith.constant 3 : index
    %c0_38 = arith.constant 0 : index
    %c0_39 = arith.constant 0 : index
    %60 = vector.load %arg13[%c0_36, %c3_37, %c0_38, %c0_39] : memref<1x4x8x8xf32, #tpu.memory_space<vmem>>, vector<1x1x8x8xf32>
    %61 = vector.shape_cast %60 : vector<1x1x8x8xf32> to vector<8x8xf32>
    %62 = vector.shape_cast %59 : vector<8x8xf32> to vector<1x1x8x8xf32>
    tpu.vector_store %arg13[%c0_36, %c3_37, %c0_38, %c0_39], %62 {strides = array<i32>} : memref<1x4x8x8xf32, #tpu.memory_space<vmem>>, vector<1x1x8x8xf32>,
    return
  }
  func.func @transform_0(%arg0: i32, %arg1: i32) -> (i32, i32, i32) {
    %c0_i32 = arith.constant 0 : i32
    %c0_i32_0 = arith.constant 0 : i32
    %c0_i32_1 = arith.constant 0 : i32
    return %arg0, %c0_i32, %c0_i32_0 : i32, i32, i32
  }
  func.func @transform_1(%arg0: i32, %arg1: i32) -> (i32, i32) {
    %c0_i32 = arith.constant 0 : i32
    %c0_i32_0 = arith.constant 0 : i32
    %c0_i32_1 = arith.constant 0 : i32
    return %c0_i32, %c0_i32_0 : i32, i32
  }
  func.func @transform_2(%arg0: i32, %arg1: i32) -> (i32, i32) {
    %c0_i32 = arith.constant 0 : i32
    %c0_i32_0 = arith.constant 0 : i32
    %c0_i32_1 = arith.constant 0 : i32
    return %c0_i32, %c0_i32_0 : i32, i32
  }
  func.func @transform_3(%arg0: i32, %arg1: i32) -> (i32, i32) {
    %c0_i32 = arith.constant 0 : i32
    %c0_i32_0 = arith.constant 0 : i32
    %c0_i32_1 = arith.constant 0 : i32
    return %c0_i32, %c0_i32_0 : i32, i32
  }
  func.func @transform_4(%arg0: i32, %arg1: i32) -> (i32, i32) {
    %c0_i32 = arith.constant 0 : i32
    %c0_i32_0 = arith.constant 0 : i32
    %c0_i32_1 = arith.constant 0 : i32
    return %c0_i32, %c0_i32_0 : i32, i32
  }
  func.func @transform_5(%arg0: i32, %arg1: i32) -> (i32, i32) {
    %c0_i32 = arith.constant 0 : i32
    %c0_i32_0 = arith.constant 0 : i32
    %c0_i32_1 = arith.constant 0 : i32
    return %c0_i32, %c0_i32_0 : i32, i32
  }
  func.func @transform_6(%arg0: i32, %arg1: i32) -> (i32, i32) {
    %c0_i32 = arith.constant 0 : i32
    %c0_i32_0 = arith.constant 0 : i32
    %c0_i32_1 = arith.constant 0 : i32
    return %c0_i32, %c0_i32_0 : i32, i32
  }
  func.func @transform_7(%arg0: i32, %arg1: i32) -> (i32, i32, i32) {
    %c0_i32 = arith.constant 0 : i32
    %c0_i32_0 = arith.constant 0 : i32
    %c0_i32_1 = arith.constant 0 : i32
    %c0_i32_2 = arith.constant 0 : i32
    return %c0_i32, %c0_i32_0, %c0_i32_1 : i32, i32, i32
  }
  func.func @transform_8(%arg0: i32, %arg1: i32) -> (i32, i32) {
    %c0_i32 = arith.constant 0 : i32
    %c0_i32_0 = arith.constant 0 : i32
    %c0_i32_1 = arith.constant 0 : i32
    return %c0_i32, %c0_i32_0 : i32, i32
  }
  func.func @transform_9(%arg0: i32, %arg1: i32) -> (i32, i32) {
    %c0_i32 = arith.constant 0 : i32
    %c0_i32_0 = arith.constant 0 : i32
    %c0_i32_1 = arith.constant 0 : i32
    return %c0_i32, %c0_i32_0 : i32, i32
  }
  func.func @transform_10(%arg0: i32, %arg1: i32) -> (i32, i32) {
    %c0_i32 = arith.constant 0 : i32
    %c0_i32_0 = arith.constant 0 : i32
    %c0_i32_1 = arith.constant 0 : i32
    return %c0_i32, %c0_i32_0 : i32, i32
  }
  func.func @transform_11(%arg0: i32, %arg1: i32) -> (i32, i32, i32, i32) {
    %c0_i32 = arith.constant 0 : i32
    %c0_i32_0 = arith.constant 0 : i32
    %c0_i32_1 = arith.constant 0 : i32
    return %arg0, %c0_i32, %arg1, %c0_i32_0 : i32, i32, i32, i32
  }
}

</mosaic_0001>

<bundles_post_ra>
// kernel: tpu_custom_call.1
= control target key start
LH: loop header
LB: loop body
LE: loop exit
PB: predicated region body
PF: predicated region fallthrough
CT: control target
= control target key end

     0   :  { %s2581_s0 = inlined_call_operand.hbm [shape: f32[2,8,32], index: 0, kind: input, shape index: {}]   ;;  %s2582_s1 = inlined_call_operand.vmem [shape: f32[32,64], index: 1, kind: input, shape index: {}]   ;;  %s2583_s2 = inlined_call_operand.vmem [shape: f32[1,64], index: 2, kind: input, shape index: {}]   ;;  %s2584_s3 = inlined_call_operand.hbm [shape: f32[32,32], index: 3, kind: input, shape index: {}]   ;;  %s2585_s4 = inlined_call_operand.vmem [shape: f32[1,32], index: 4, kind: input, shape index: {}]   ;;  %s2586_s5 = inlined_call_operand.hbm [shape: f32[32,32], index: 5, kind: input, shape index: {}]   ;;  %s2587_s6 = inlined_call_operand.vmem [shape: f32[1,32], index: 6, kind: input, shape index: {}]   ;;  %s2588_s7 = inlined_call_operand.hbm [shape: f32[4,32,32], index: 7, kind: input, shape index: {}]   ;;  %s2589_s8 = inlined_call_operand.vmem [shape: f32[32,4], index: 8, kind: input, shape index: {}]   ;;  %s2590_s9 = inlined_call_operand.vmem [shape: f32[4,32], index: 9, kind: input, shape index: {}]   ;;  %s2591_s10 = inlined_call_operand.vmem [shape: f32[4,1], index: 10, kind: input, shape index: {}]   ;;  %s2592_s11 = inlined_call_operand.hbm [shape: f32[2,4,8,8], index: 11, kind: output, shape index: {}]  }
   0x1   :  { %2601 = sst [smem:[#allocation21_spill]] %s2584_s3 }
   0x2   :  { %2602 = sst [smem:[#allocation22_spill]] %s2586_s5 }
   0x3   :  { %2603 = sst [smem:[#allocation23_spill]] %s2588_s7 }
   0x4   :  { %2604 = sst [smem:[#allocation24_spill]] %s2592_s11 }
   0x5   :  { %16 = vsyncpa [#allocation6], 0 }
   0x6   :  { %18 = vsyncpa [#allocation6 + $0x1], 0 }
   0x7   :  { %19 = vsyncpa [#allocation9], 0 }
   0x8   :  { %20 = vsyncpa [#allocation12], 0 }
   0x9   :  { %21 = vsyncpa [#allocation7], 0 }
   0xa   :  { %23 = vsyncpa [#allocation7 + $0x1], 0  ;;  %s2247_s17 = smov 0   ;;  %s2249_s18 = smov 0  }
   0xb   :  { %s2251_s19 = smov 0   ;;  %s2253_s20 = smov 0  }
   0xc   :  { %s2255_s21 = smov 0   ;;  %s2257_s22 = smov 0  }
   0xd LB: > { %2605 = sst [smem:[#allocation18_spill]] %s2149_s17  ;;  %s1658_s23 = sadd.s32 4294967295, %s2169_s22   ;;  %s2169_s22 = sphi %s2257_s22, %s29_s22   ;;  %s2165_s21 = sphi %s2255_s21, %s2632_s21   ;;  %s2161_s20 = sphi %s2253_s20, %s2631_s20   ;;  %s2157_s19 = sphi %s2251_s19, %s2630_s19   ;;  %s2153_s18 = sphi %s2249_s18, %s2629_s18   ;;  %s2149_s17 = sphi %s2247_s17, %s2628_s17  }
   0xe   : > { %s1659_s24 = sadd.s32 4294967294, %s2169_s22   ;;  %p61_p0 = scmp.ne.s32.totalorder %s2153_s18, %s2149_s17 }
   0xf   : > { %p2281_p1 = scmp.eq.s32.totalorder %s1658_s23, 0  ;;  %p2285_p2 = scmp.eq.s32.totalorder %s1658_s23, 1 }
  0x10   : > { %p303_p3 = scmp.eq.s32.totalorder %s1659_s24, 1  ;;  %p1660_p5 = scmp.ge.s32.totalorder %s2169_s22, 1 }
  0x11   : > { %s2606_s25 = scalar_select %p2281_p1, 1, 0 }
  0x12   : > { %p2291_p4 = por %p2281_p1, %p61_p0  ;;  %p2296_p6 = por %p303_p3, %p61_p0 }
  0x13   : > { %p310_p7 = scmp.lt.s32.totalorder %s2169_s22, 3  ;;  %s2171_s30 = smov [#allocation8]  }
  0x14   : > { %s2608_s27 = scalar_select %p2291_p4, 1, 0 }
  0x15   : > { %s2609_s28 = scalar_select %p2296_p6, 1, 0 }
  0x16   : > { %p2301_p8 = pnand %p1660_p5, %p310_p7  ;;  %s328_s12 = sshll.u32 %s2171_s30, 4  ;;  %s329_s12 = int_to_ptr.vmem [resolvable:$true] %s328_s12 }
  0x17   : > { %2610 = sst [smem:[#allocation19_spill]] %s2609_s28  ;;  %s2172_s14 = smov [#allocation10]  }
  0x18   : > { %s2611_s29 = scalar_select %p2301_p8, 1, 0 }
  0x19   : > { %p1882_p9 = pneg %p2301_p8  ;;  %s344_s15 = sshll.u32 %s2172_s14, 4  ;;  %s345_s15 = int_to_ptr.vmem [resolvable:$true] %s344_s15 }
  0x1a   : > { %s2173_s16 = smov [#allocation11]   ;;  %s1986_s24 = scalar_lea.vmem %s329_s12, 512 }
  0x1b   : > { %p2310_p11 = pnand %p1882_p9, %p2281_p1  ;;  %s360_s23 = sshll.u32 %s2173_s16, 4  ;;  %s361_s23 = int_to_ptr.vmem [resolvable:$true] %s360_s23 }
  0x1c   : > { %p1987_p13 = scmp.ne.s32.totalorder %s329_s12, %s1986_s24  ;;  %p1994_p5 = scmp.lt.s32.totalorder %s329_s12, %s329_s12 }
  0x1d   : > { %p1977_p12 = pneg %p2310_p11  ;;  %p1995_p7 = scmp.lt.s32.totalorder %s1986_s24, %s1986_s24 }
  0x1f   : > { %p1989_p0 = pnand %p1987_p13, %p1977_p12  ;;  %p1996_p9 = por %p1995_p7, %p1994_p5 }
  0x21   : > { %p1990_p3 = pneg %p1989_p0 }
  0x23   : > { %p1997_p10 = pnand %p1996_p9, %p1990_p3 }
  0x25   : > { %2000 = shalt.err (!%p1997_p10)
}
  0x26   : > { %s2174_s30 = smov 128   ;;  %s2175_s14 = smov 8  }
  0x27   : > { %s2613_s3 = sld [smem:[#allocation21_spill]]  ;;  %s2012_s17 = scalar_lea.vmem %s345_s15, 512 }
  0x28   : > { %p2013_p6 = scmp.ne.s32.totalorder %s345_s15, %s2012_s17  ;;  %p2020_p1 = scmp.lt.s32.totalorder %s345_s15, %s345_s15 }
  0x29   : > { %p2021_p4 = scmp.lt.s32.totalorder %s2012_s17, %s2012_s17 }
  0x2a   : > { %p2015_p13 = pnand %p2013_p6, %p1977_p12 }
  0x2b   : > { %p2022_p5 = por %p2021_p4, %p2020_p1 }
  0x2c   : > { %p2016_p0 = pneg %p2015_p13 }
  0x2d   : > { %1885 = dma.hbm_to_vmem [thread:$0]  (!%p2310_p11), %s2613_s3, 512, %s329_s12, [#allocation9], %s2174_s30, %s2174_s30, %s2175_s14  }
  0x2e   : > { %p2023_p3 = pnand %p2022_p5, %p2016_p0 }
  0x30   : > { %2026 = shalt.err (!%p2023_p3)
}
  0x31   : > { %s2614_s5 = sld [smem:[#allocation22_spill]]  ;;  %s2038_s28 = scalar_lea.vmem %s361_s23, 2048 }
  0x32   : > { %p2039_p10 = scmp.ne.s32.totalorder %s361_s23, %s2038_s28  ;;  %p2046_p9 = scmp.lt.s32.totalorder %s361_s23, %s361_s23 }
  0x33   : > { %p2047_p13 = scmp.lt.s32.totalorder %s2038_s28, %s2038_s28 }
  0x34   : > { %p2041_p7 = pnand %p2039_p10, %p1977_p12 }
  0x35   : > { %p2048_p8 = por %p2047_p13, %p2046_p9 }
  0x36   : > { %p2042_p6 = pneg %p2041_p7 }
  0x37   : > { %1888 = dma.hbm_to_vmem [thread:$0]  (!%p2310_p11), %s2614_s5, 512, %s345_s15, [#allocation9], %s2174_s30, %s2174_s30, %s2175_s14  }
  0x38   : > { %p2049_p1 = pnand %p2048_p8, %p2042_p6 }
  0x3a   : > { %2052 = shalt.err (!%p2049_p1)
}
  0x3b   : > { %s2615_s7 = sld [smem:[#allocation23_spill]]  ;;  %s48_s11 = sadd.s32 1, %s2157_s19 }
  0x3c   : > { %s41_s15 = sadd.s32 1, %s2165_s21  ;;  %p55_p4 = scmp.ne.s32.totalorder %s2157_s19, %s2153_s18 }
  0x3d   : > { %p43_p8 = scmp.ge.s32.totalorder %s41_s15, 2  ;;  %p56_p12 = scmp.eq.s32.totalorder %s2169_s22, 0 }
  0x3e   : > { %p2347_p0 = por %p2285_p2, %p55_p4  ;;  %p1903_p5 = scmp.lt.s32.totalorder %s2169_s22, 2 }
  0x3f   : > { %s2634_s15 = smov (%p43_p8, %s41_s15), 0  ;;  %p57_p3 = por %p56_p12, %p55_p4 }
  0x40   : > { %2617 = sst [smem:[#allocation20_spill]] %s2634_s15  ;;  %s383_s16 = sand.u32 1, %s2157_s19  }
  0x41   : > { %1891 = dma.hbm_to_vmem [thread:$0]  (!%p2310_p11), %s2615_s7, 2048, %s361_s23, [#allocation12], %s2174_s30, %s2174_s30, %s2175_s14  }
  0x42   : > { %s45_s24 = ssub.s32 %s2165_s21, %s2634_s15  ;;  %s1665_s23 = sshll.u32 %s383_s16, 3 }
  0x43   : > { %p46_p10 = scmp.eq.s32.totalorder %s45_s24, 0  ;;  %s1666_s30 = sshll.u32 %s2165_s21, 7 }
  0x44   : > { %s392_s26 = scalar_lea.hbm %s2581_s0, %s1666_s30  ;;  %s387_s12 = scalar_lea.vmem [#allocation5], %s1665_s23 }
  0x45   : > { %s2359_s14 = scalar_select %p46_p10, %s2157_s19, %s48_s11  }
  0x46   : > { %s394_s3 = sshll.u32 %s387_s12, 4  ;;  %p2366_p2 = pnand %p1903_p5, %p57_p3  ;;  %s395_s3 = int_to_ptr.vmem [resolvable:$true] %s394_s3 }
  0x47   : > { %s384_s7 = scalar_lea.sflag [#allocation6], %s383_s16  ;;  %s2066_s24 = scalar_lea.vmem %s395_s3, 128 }
  0x48   : > { %p2055_p11 = pneg %p2366_p2  ;;  %p2067_p7 = scmp.ne.s32.totalorder %s395_s3, %s2066_s24 }
  0x49   : > { %s2176_s11 = smov [#allocation5]  }
  0x4a   : > { %p2069_p6 = pnand %p2067_p7, %p2055_p11  ;;  %s2071_s15 = sshll.u32 %s2176_s11, 4  ;;  %s2072_s15 = int_to_ptr.vmem [resolvable:$false] %s2071_s15 }
  0x4b   : > { %s2073_s30 = scalar_lea.vmem %s2072_s15, 256  ;;  %p2074_p13 = scmp.lt.s32.totalorder %s395_s3, %s2072_s15 }
  0x4c   : > { %p2070_p9 = pneg %p2069_p6  ;;  %p2075_p1 = scmp.lt.s32.totalorder %s2073_s30, %s2066_s24 }
  0x4e   : > { %p2076_p4 = por %p2075_p1, %p2074_p13 }
  0x50   : > { %p2077_p8 = pnand %p2076_p4, %p2070_p9 }
  0x52   : > { %2080 = shalt.err (!%p2077_p8)
}
  0x53   : > { %1895 = dma.hbm_to_vmem [thread:$0]  (!%p2366_p2), %s392_s26, 128, %s395_s3, %s384_s7  }
  0x54   : > { %p2619_p12 = scmp.ne.s32.totalorder %s2611_s29, 0 }
  0x55   : > { %s2377_s16 = sand.u32 (!%p2619_p12), 1, %s2153_s18   ;;  %p2620_p5 = scmp.ne.s32.totalorder (!%p2619_p12), %s2608_s27, 0 }
  0x56   : > { %403 = sbr.rel (%p2619_p12) target bundleno = 1321 (0x529), region = 64  ;;  %s1668_s23 = sshll.u32 (!%p2619_p12), %s2377_s16, 3 }
  0x57   : > { %s406_s28 = scalar_lea.sflag (!%p2619_p12), [#allocation6], %s2377_s16  ;;  %s409_s17 = scalar_lea.vmem (!%p2619_p12), [#allocation5], %s1668_s23 }
  0x5b   : > { %2132 = dma.done.wait (%p2620_p5), %s406_s28, 128  }
  0x5c   : > { %2134 = vsyncadd (%p2620_p5), %s406_s28, 4294967168  ;;  %p2621_p3 = scmp.ne.s32.totalorder %s2606_s25, 0 }
  0x5e   : > { %2136 = dma.done.wait (%p2621_p3), [#allocation9], 1024  }
  0x5f   : > { %2138 = vsyncadd (%p2621_p3), [#allocation9], 4294966272 }
  0x60   : > { %2140 = dma.done.wait (%p2621_p3), [#allocation12], 2048  }
  0x61   : > { %2142 = vsyncadd (%p2621_p3), [#allocation12], 4294965248  ;;  %v2177_v0 = vmov 0.0   ;;  %vm2178_vm0 = vmmov 0   ;;  %v468_v1 = vld [vmem:[%s2582_s1 + $0x18] sm:$0xff]  ;;  %v467_v2 = vld [vmem:[%s2582_s1 + $0x10] sm:$0xff]  ;;  %v1045_v55 = vlaneseq }
  0x62   : > { %1753 = vmatprep.subr.mxu0 %v2177_v0  ;;  %1761 = vmatprep.mubr.msk.f32.mxu0 %vm2178_vm0, %v2177_v0  ;;  %v554_v3 = vld [vmem:[#allocation8 + $0x18] sm:$0xff]  ;;  %v466_v4 = vld [vmem:[%s2582_s1 + $0x8] sm:$0xff]  ;;  %vm476_vm1 = vcmask 261120   ;;  %v553_v7 = vld [vmem:[#allocation8 + $0x10] sm:$0xff]  ;;  %s2179_s11 = smov 96   ;;  %v2180_v34 = vmov 0  }
  0x63   : > { %1764 = vmatprep.subr.mxu1 %v2177_v0  ;;  %1772 = vmatprep.mubr.msk.f32.mxu1 %vm2178_vm0, %v2177_v0  ;;  %v465_v5 = vld [vmem:[%s2582_s1] sm:$0xff]  ;;  %v552_v8 = vld [vmem:[#allocation8 + $0x8] sm:$0xff]  ;;  %v637_v11 = vld [vmem:[#allocation10 + $0x10] sm:$0xff]  ;;  %v2181_v45 = vmov 3   ;;  %vm805_vm2 = vcmask 60416   ;;  %v1046_v59 = vshrl.u32 %v1045_v55, 7 }
  0x64   : > { %1754 = vmatpush3.msra.mxu0 %v468_v1  ;;  %1765 = vmatpush3.msra.mxu1 %v554_v3  ;;  %v464_v6 = vld [vmem:[%s409_s17] sm:$0xff]  ;;  %v551_v9 = vld [vmem:[#allocation8] sm:$0xff]  ;;  %v636_v12 = vld [vmem:[#allocation10 + $0x8] sm:$0xff]  ;;  %s1672_s23 = sshll.u32 %s2377_s16, 5  ;;  %vm1050_vm3 = vcmask 64512   ;;  %s1702_s3 = sshll.u32 %s2161_s20, 9 }
  0x65   : > { %1755 = vmatprep.subr.mxu0 %v2177_v0  ;;  %1766 = vmatprep.subr.mxu1 %v2177_v0  ;;  %v638_v10 = vld [vmem:[#allocation10 + $0x18] sm:$0xff]  ;;  %v635_v13 = vld [vmem:[#allocation10] sm:$0xff]  ;;  %v892_v21 = vld [vmem:[#allocation11 + $0x10] sm:$0xff]  ;;  %v1365_v60 = vsub.s32 2, %v1046_v59  ;;  %v1524_v61 = vsub.s32 3, %v1046_v59  ;;  %s459_s28 = scalar_lea.vmem [#allocation13], %s1672_s23 }
  0x66   : > { %1756 = vmatpush3.msra.mxu0 %v467_v2  ;;  %1767 = vmatpush3.msra.mxu1 %v553_v7  ;;  %v1673_v14 = vld [vmem:[%s2583_s2] ss:$0 sm:$0xff]  ;;  %v891_v22 = vld [vmem:[#allocation11 + $0x8] sm:$0xff]  ;;  %v890_v23 = vld [vmem:[#allocation11] sm:$0xff]  ;;  %s1544_s17 = sshll.u32 %s459_s28, 4  ;;  %s2622_s27 = sld [smem:[#allocation24_spill]]  ;;  %s2527_s17 = int_to_ptr.vmem [resolvable:$true] %s1544_s17 }
  0x67   : > { %1757 = vmatprep.subr.mxu0 %v2177_v0  ;;  %1768 = vmatprep.subr.mxu1 %v2177_v0  ;;  %v893_v19 = vld [vmem:[#allocation11 + $0x18] sm:$0xff]  ;;  %v1055_v30 = vld [vmem:[#allocation11 + $0x30] sm:$0xff]  ;;  %v1054_v31 = vld [vmem:[#allocation11 + $0x28] sm:$0xff]  ;;  %s1530_s29 = scalar_lea.sflag [#allocation7], %s2377_s16  ;;  %s2081_s15 = scalar_lea.vmem %s2527_s17, 512 }
  0x68   : > { %1758 = vmatpush3.msra.mxu0 %v466_v4  ;;  %1769 = vmatpush3.msra.mxu1 %v552_v8  ;;  %v1675_v24 = vld [vmem:[%s2585_s4] ss:$0 sm:$0xff]  ;;  %v1053_v32 = vld [vmem:[#allocation11 + $0x20] sm:$0xff]  ;;  %v815_v40 = vld [vmem:[%s2589_s8 + $0x18] sm:$0xff]  ;;  %v2182_v4 = vmov 1   ;;  %p2082_p10 = scmp.ne.s32.totalorder %s2527_s17, %s2081_s15  ;;  %s2184_s20 = smov [#allocation13]  }
  0x69   : > { %1759 = vmatprep.subr.mxu0 %v2177_v0  ;;  %1770 = vmatprep.subr.mxu1 %v2177_v0  ;;  %v1056_v28 = vld [vmem:[#allocation11 + $0x38] sm:$0xff]  ;;  %v814_v41 = vld [vmem:[%s2589_s8 + $0x10] sm:$0xff]  ;;  %v813_v42 = vld [vmem:[%s2589_s8 + $0x8] sm:$0xff]  ;;  %s2085_s26 = sshll.u32 %s2184_s20, 4  ;;  %s2086_s26 = int_to_ptr.vmem [resolvable:$false] %s2085_s26 }
  0x6a   : > { %1760 = vmatpush3.msra.mxu0 %v465_v5  ;;  %1771 = vmatpush3.msra.mxu1 %v551_v9  ;;  %v723_v33 = vld [vmem:[%s2591_s10] sm:$0xf]  ;;  %v1214_v50 = vld [vmem:[#allocation11 + $0x50] sm:$0xff]  ;;  %v1213_v52 = vld [vmem:[#allocation11 + $0x48] sm:$0xff]  ;;  %v2183_v5 = vmov 2   ;;  %p2083_p2 = pnand %p2082_p10, %p2347_p0  ;;  %s2087_s12 = scalar_lea.vmem %s2086_s26, 1024 }
  0x6b   : > { %1762 = vmatmul.mubr.msk.f32.vlgmr.msra.gmra.mxu0 %vm476_vm1, %v464_v6  ;;  %1775 = vmatprep.subr.mxu0 %v2177_v0  ;;  %v1677_v35 = vld [vmem:[%s2587_s6] ss:$0 sm:$0xff]  ;;  %v1212_v53 = vld [vmem:[#allocation11 + $0x40] sm:$0xff]  ;;  %p2088_p7 = scmp.lt.s32.totalorder %s2527_s17, %s2086_s26  ;;  %p2089_p6 = scmp.lt.s32.totalorder %s2087_s12, %s2081_s15 }
  0x6c   : > { %1783 = vmatprep.mubr.msk.f32.mxu0 %vm2178_vm0, %v2177_v0  ;;  %1786 = vmatprep.subr.mxu1 %v2177_v0  ;;  %v722_v39 = vld [vmem:[%s2590_s9] sm:$0xf]  ;;  %s2532_s25 = scalar_lea.hbm %s2622_s27, %s1702_s3  ;;  %p2084_p11 = pneg %p2083_p2 }
  0x6d   : > { %1776 = vmatpush3.msra.mxu0 %v638_v10  ;;  %1970 = vset.pattern.permute.xlu0 %v2180_v34  ;;  %v812_v44 = vld [vmem:[%s2589_s8] sm:$0xff]  ;;  %p2090_p9 = por %p2089_p6, %p2088_p7 }
  0x6e   : > { %1777 = vmatprep.subr.mxu0 %v2177_v0  ;;  %1971 = vset.pattern.permute.xlu1 %v2180_v34  ;;  %v1215_v48 = vld [vmem:[#allocation11 + $0x58] sm:$0xff] }
  0x6f   : > { %1778 = vmatpush3.msra.mxu0 %v637_v11  ;;  %v1374_v10 = vld [vmem:[#allocation11 + $0x78] sm:$0xff]  ;;  %p2091_p13 = pnand %p2090_p9, %p2084_p11 }
  0x70   : > { %1779 = vmatprep.subr.mxu0 %v2177_v0 }
  0x71   : > { %1780 = vmatpush3.msra.mxu0 %v636_v12  ;;  %v1373_v12 = vld [vmem:[#allocation11 + $0x70] sm:$0xff] }
  0x72   : > { %1781 = vmatprep.subr.mxu0 %v2177_v0 }
  0x73   : > { %1782 = vmatpush3.msra.mxu0 %v635_v13 }
  0x74   : > { %1802 = vmatprep.subr.mxu0 %v2177_v0 }
 0x12b   : > { %v546_v15 = vpop.f32.mrf.mxu0 }
 0x12c   : > { %v547_v16 = vadd.f32 %v1673_v14, %v546_v15  ;;  %v1372_v14 = vld [vmem:[#allocation11 + $0x68] sm:$0xff]  ;;  %v1371_v15 = vld [vmem:[#allocation11 + $0x60] sm:$0xff] }
 0x12d   : > { %v1763_v17 = vpop.f32.mrf.mxu0 }
 0x12e   : > { %v550_v18 = vmax.f32 %v547_v16, 0.0  ;;  %v1047_v16 = vsub.s32 0, %v1046_v59 }
 0x130   : > { %646 = vrot.lane.b32.xlu0 %v550_v18, %s2179_s11  ;;  %1773 = vmatmul.mubr.msk.f32.vlgmr.msra.gmra.mxu1 %vm476_vm1, %v550_v18 }
 0x131   : > { %1788 = vmatprep.mubr.msk.f32.mxu1 %vm2178_vm0, %v2177_v0 }
 0x134   : > { %726 = vperm.xlu0 %1970, %v723_v33  }
 0x138   : > { %1974 = vset.pattern.permute.xlu0 %v2181_v45 }
 0x1a2   : > { %v647_v20 = vpop.permute.xlu0 %646 }
 0x1a3   : > { %1784 = vmatmul.mubr.msk.f32.vlgmr.msra.gmra.mxu0 %vm476_vm1, %v647_v20  ;;  %v1206_v20 = vsub.s32 1, %v1046_v59 }
 0x1a4   : > { %1803 = vmatpush3.msra.mxu0 %v893_v19  ;;  %1810 = vmatprep.mubr.msk.f32.mxu0 %vm2178_vm0, %v2177_v0 }
 0x1a5   : > { %1804 = vmatprep.subr.mxu0 %v2177_v0 }
 0x1a6   : > { %1805 = vmatpush3.msra.mxu0 %v892_v21 }
 0x1a7   : > { %1806 = vmatprep.subr.mxu0 %v2177_v0 }
 0x1a8   : > { %1807 = vmatpush3.msra.mxu0 %v891_v22 }
 0x1a9   : > { %1808 = vmatprep.subr.mxu0 %v2177_v0 }
 0x1aa   : > { %1809 = vmatpush3.msra.mxu0 %v890_v23 }
 0x1ab   : > { %1818 = vmatprep.subr.mxu0 %v2177_v0 }
 0x1af   : > { %v727_v54 = vpop.permute.xlu0 %726 }
 0x1f0   : > { %v631_v25 = vpop.f32.mrf.mxu1 }
 0x1f1   : > { %v632_v26 = vadd.f32 %v1675_v24, %v631_v25 }
 0x1f2   : > { %v1774_v27 = vpop.f32.mrf.mxu1 }
 0x1f3   : > { %720 = vst.msk [vmem:[#allocation2] sm:$0xff] %vm476_vm1, %v632_v26 }
 0x1fa   : > { %v2443_v29 = vld [vmem:[#allocation2] sm:$0xff] }
 0x1fb   : > { %1811 = vmatmul.mubr.msk.f32.vlgmr.msra.gmra.mxu0 %vm476_vm1, %v2443_v29 }
 0x1fc   : > { %1819 = vmatpush3.msra.mxu0 %v1056_v28  ;;  %1826 = vmatprep.mubr.msk.f32.mxu0 %vm2178_vm0, %v2177_v0 }
 0x1fd   : > { %1820 = vmatprep.subr.mxu0 %v2177_v0 }
 0x1fe   : > { %1821 = vmatpush3.msra.mxu0 %v1055_v30 }
 0x1ff   : > { %1822 = vmatprep.subr.mxu0 %v2177_v0 }
 0x200   : > { %1823 = vmatpush3.msra.mxu0 %v1054_v31 }
 0x201   : > { %1824 = vmatprep.subr.mxu0 %v2177_v0 }
 0x202   : > { %1825 = vmatpush3.msra.mxu0 %v1053_v32 }
 0x203   : > { %1827 = vmatmul.mubr.msk.f32.vlgmr.msra.gmra.mxu0 %vm476_vm1, %v2443_v29  ;;  %1845 = vmatprep.subr.mxu0 %v2177_v0 }
 0x204   : > { %1847 = vmatprep.mubr.msk.f32.mxu0 %vm2178_vm0, %v2177_v0 }
 0x263   : > { %v716_v36 = vpop.f32.mrf.mxu0 }
 0x264   : > { %v717_v37 = vadd.f32 %v1677_v35, %v716_v36 }
 0x265   : > { %v1785_v38 = vpop.f32.mrf.mxu0 }
 0x266   : > { %721 = vst.msk [vmem:[#allocation3] sm:$0xff] %vm476_vm1, %v717_v37  ;;  %1787 = vmatpush3.xpose.msk.msra.mxu1 %vm476_vm1, %v717_v37 }
 0x267   : > { %1791 = vmatprep.subr.mxu1 %v2177_v0 }
 0x269   : > { %1789 = vmatmul.mubr.msk.f32.vlgmr.msra.gmra.mxu1 %vm476_vm1, %v722_v39 }
 0x26a   : > { %1792 = vmatpush3.msra.mxu1 %v815_v40  ;;  %1799 = vmatprep.mubr.msk.f32.mxu1 %vm2178_vm0, %v2177_v0 }
 0x26b   : > { %1793 = vmatprep.subr.mxu1 %v2177_v0 }
 0x26c   : > { %1794 = vmatpush3.msra.mxu1 %v814_v41 }
 0x26d   : > { %1795 = vmatprep.subr.mxu1 %v2177_v0  ;;  %v810_v43 = vld [vmem:[#allocation3] sm:$0xff] }
 0x26e   : > { %1796 = vmatpush3.msra.mxu1 %v813_v42  ;;  %1846 = vmatpush3.xpose.msk.msra.mxu0 %vm476_vm1, %v810_v43 }
 0x26f   : > { %1797 = vmatprep.subr.mxu1 %v2177_v0  ;;  %1850 = vmatprep.subr.mxu0 %v2177_v0 }
 0x270   : > { %1798 = vmatpush3.msra.mxu1 %v812_v44 }
 0x271   : > { %1800 = vmatmul.mubr.msk.f32.vlgmr.msra.gmra.mxu1 %vm476_vm1, %v2443_v29  ;;  %1813 = vmatprep.subr.mxu1 %v2177_v0 }
 0x272   : > { %1814 = vmatpush3.xpose.msk.msra.mxu1 %vm476_vm1, %v810_v43  ;;  %1815 = vmatprep.mubr.msk.f32.mxu1 %vm2178_vm0, %v2177_v0 }
 0x273   : > { %1829 = vmatprep.subr.mxu1 %v2177_v0 }
 0x2bb   : > { %v960_v46 = vpop.f32.mrf.mxu0 }
 0x2bc   : > { %1816 = vmatmul.mubr.msk.f32.vlgmr.msra.gmra.mxu1 %vm476_vm1, %v960_v46 }
 0x2bd   : > { %1830 = vmatpush3.xpose.msk.msra.mxu1 %vm476_vm1, %v810_v43  ;;  %v1812_v47 = vpop.f32.mrf.mxu0  ;;  %1831 = vmatprep.mubr.msk.f32.mxu1 %vm2178_vm0, %v2177_v0 }
 0x2be   : > { %1834 = vmatprep.subr.mxu1 %v2177_v0 }
 0x2c3   : > { %v1123_v49 = vpop.f32.mrf.mxu0 }
 0x2c4   : > { %1832 = vmatmul.mubr.msk.f32.vlgmr.msra.gmra.mxu1 %vm476_vm1, %v1123_v49 }
 0x2c5   : > { %1835 = vmatpush3.msra.mxu1 %v1215_v48  ;;  %v1828_v51 = vpop.f32.mrf.mxu0  ;;  %1842 = vmatprep.mubr.msk.f32.mxu1 %vm2178_vm0, %v2177_v0 }
 0x2c6   : > { %1836 = vmatprep.subr.mxu1 %v2177_v0 }
 0x2c7   : > { %1837 = vmatpush3.msra.mxu1 %v1214_v50 }
 0x2c8   : > { %1838 = vmatprep.subr.mxu1 %v2177_v0 }
 0x2c9   : > { %1839 = vmatpush3.msra.mxu1 %v1213_v52 }
 0x2ca   : > { %1840 = vmatprep.subr.mxu1 %v2177_v0 }
 0x2cb   : > { %1841 = vmatpush3.msra.mxu1 %v1212_v53 }
 0x2cc   : > { %1843 = vmatmul.mubr.msk.f32.vlgmr.msra.gmra.mxu1 %vm476_vm1, %v2443_v29  ;;  %1861 = vmatprep.subr.mxu1 %v2177_v0 }
 0x2cd   : > { %1862 = vmatpush3.xpose.msk.msra.mxu1 %vm476_vm1, %v810_v43  ;;  %1863 = vmatprep.mubr.msk.f32.mxu1 %vm2178_vm0, %v2177_v0 }
 0x329   : > { %v801_v56 = vpop.f32.mrf.mxu1 }
 0x32a   : > { %v802_v57 = vadd.f32 %v801_v56, %v727_v54 }
 0x32b   : > { %v1790_v58 = vpop.f32.mrf.mxu1 }
 0x32c   : > { %806 = vst.msk [vmem:[#allocation4] sm:$0xf] %vm805_vm2, %v802_v57 }
 0x331   : > { %v886_v62 = vpop.f32.mrf.mxu1 }
 0x332   : > { %1446 = vperm.xlu0 %1974, %v886_v62   ;;  %966 = vperm.xlu1 %1971, %v886_v62  }
 0x333   : > { %v1801_v63 = vpop.f32.mrf.mxu1  ;;  %v811_v1 = vld [vmem:[#allocation4] sm:$0xf] }
 0x334   : > { %v1366_v2 = vrot.slane %v811_v1, %v1365_v60  ;;  %v1525_v3 = vrot.slane %v811_v1, %v1524_v61  ;;  %v1048_v18 = vrot.slane %v811_v1, %v1047_v16  ;;  %v1207_v23 = vrot.slane %v811_v1, %v1206_v20 }
 0x336   : > { %1972 = vset.pattern.permute.xlu1 %v2182_v4 }
 0x337   : > { %1128 = vperm.xlu1 %1972, %v886_v62  }
 0x33b   : > { %1973 = vset.pattern.permute.xlu1 %v2183_v5 }
 0x33c   : > { %1287 = vperm.xlu1 %1973, %v886_v62  }
 0x37c   : > { %v1041_v6 = vpop.f32.mrf.mxu1 }
 0x37e   : > { %v1817_v7 = vpop.f32.mrf.mxu1 }
 0x384   : > { %v1200_v8 = vpop.f32.mrf.mxu1 }
 0x386   : > { %v1833_v9 = vpop.f32.mrf.mxu1 }
 0x38c   : > { %v1282_v11 = vpop.f32.mrf.mxu1 }
 0x38d   : > { %1848 = vmatmul.mubr.msk.f32.vlgmr.msra.gmra.mxu0 %vm476_vm1, %v1282_v11 }
 0x38e   : > { %1851 = vmatpush3.msra.mxu0 %v1374_v10  ;;  %v1844_v13 = vpop.f32.mrf.mxu1  ;;  %1858 = vmatprep.mubr.msk.f32.mxu0 %vm2178_vm0, %v2177_v0 }
 0x38f   : > { %1852 = vmatprep.subr.mxu0 %v2177_v0 }
 0x390   : > { %1853 = vmatpush3.msra.mxu0 %v1373_v12 }
 0x391   : > { %1854 = vmatprep.subr.mxu0 %v2177_v0 }
 0x392   : > { %1855 = vmatpush3.msra.mxu0 %v1372_v14 }
 0x393   : > { %1856 = vmatprep.subr.mxu0 %v2177_v0 }
 0x394   : > { %1857 = vmatpush3.msra.mxu0 %v1371_v15 }
 0x395   : > { %1859 = vmatmul.mubr.msk.f32.vlgmr.msra.gmra.mxu0 %vm476_vm1, %v2443_v29 }
 0x3ad   : > { %v967_v17 = vpop.permute.xlu1 %966  ;;  %v1447_v32 = vpop.permute.xlu0 %1446 }
 0x3ae   : > { %v1042_v19 = vadd.f32 %v1041_v6, %v967_v17 }
 0x3b0   : > { %v1049_v21 = vadd.f32 %v1048_v18, %v1042_v19 }
 0x3b2   : > { %1051 = vst.msk [vmem:[%s459_s28] sm:$0xff] %vm1050_vm3, %v1049_v21  ;;  %v1129_v22 = vpop.permute.xlu1 %1128 }
 0x3b3   : > { %v1201_v24 = vadd.f32 %v1200_v8, %v1129_v22 }
 0x3b5   : > { %v1208_v0 = vadd.f32 %v1207_v23, %v1201_v24 }
 0x3b7   : > { %1688 = vst.msk [vmem:[%s459_s28 + $0x8] sm:$0xff] %vm1050_vm3, %v1208_v0  ;;  %v1288_v25 = vpop.permute.xlu1 %1287 }
 0x44d   : > { %v1359_v26 = vpop.f32.mrf.mxu0 }
 0x44e   : > { %v1360_v27 = vadd.f32 %v1359_v26, %v1288_v25 }
 0x44f   : > { %v1849_v28 = vpop.f32.mrf.mxu0 }
 0x450   : > { %v1367_v29 = vadd.f32 %v1366_v2, %v1360_v27 }
 0x452   : > { %1692 = vst.msk [vmem:[%s459_s28 + $0x10] sm:$0xff] %vm1050_vm3, %v1367_v29 }
 0x455   : > { %v1441_v30 = vpop.f32.mrf.mxu0 }
 0x456   : > { %1864 = vmatmul.mubr.msk.f32.vlgmr.msra.gmra.mxu1 %vm476_vm1, %v1441_v30 }
 0x457   : > { %v1860_v31 = vpop.f32.mrf.mxu0 }
 0x516   : > { %v1518_v33 = vpop.f32.mrf.mxu1 }
 0x517   : > { %v1519_v34 = vadd.f32 %v1518_v33, %v1447_v32 }
 0x518   : > { %v1865_v35 = vpop.f32.mrf.mxu1 }
 0x519   : > { %v1526_v36 = vadd.f32 %v1525_v3, %v1519_v34 }
 0x51b   : > { %1696 = vst.msk [vmem:[%s459_s28 + $0x18] sm:$0xff] %vm1050_vm3, %v1526_v36 }
 0x51c   : > { %2094 = shalt.err (!%p2091_p13)
}
 0x51d   : > { %s2095_s24 = scalar_lea.hbm %s2532_s25, 512  ;;  %s2099_s23 = scalar_lea.hbm %s2622_s27, 1024 }
 0x51e   : > { %p2096_p1 = scmp.ne.s32.totalorder %s2532_s25, %s2095_s24  ;;  %p2100_p12 = scmp.lt.s32.totalorder %s2532_s25, %s2622_s27 }
 0x51f   : > { %p2101_p5 = scmp.lt.s32.totalorder %s2099_s23, %s2095_s24 }
 0x520   : > { %p2097_p4 = pnand %p2096_p1, %p2347_p0 }
 0x521   : > { %p2102_p3 = por %p2101_p5, %p2100_p12 }
 0x522   : > { %p2098_p8 = pneg %p2097_p4 }
 0x524   : > { %p2103_p10 = pnand %p2102_p3, %p2098_p8 }
 0x526   : > { %2106 = shalt.err (!%p2103_p10)
}
 0x527   : > { %s2185_s5 = smov 128   ;;  %s2186_s7 = smov 8  }
 0x528   : > { %1880 = dma.vmem_to_hbm [thread:$0]  (%p2347_p0), %s2527_s17, 512, %s2532_s25, %s1530_s29, %s2185_s5, %s2185_s5, %s2186_s7  }
 0x529 PF: > { %s2623_s15 = sld [smem:[#allocation18_spill]]  ;;  %p2626_p11 = scmp.ge.s32.totalorder %s2169_s22, 2 }
 0x52a   : > { %s2624_s20 = sld [smem:[#allocation19_spill]] }
 0x52f   : > { %s1559_s26 = sand.u32 1, %s2623_s15  }
 0x530   : > { %p2625_p2 = scmp.ne.s32.totalorder %s2624_s20, 0  ;;  %s1560_s12 = scalar_lea.sflag [#allocation7], %s1559_s26 }
 0x532   : > { %p1897_p7 = pnand %p2626_p11, %p2625_p2 }
 0x534   : > { %p1898_p6 = pneg %p1897_p7 }
 0x536   : > { %2144 = dma.done.wait (%p1898_p6), %s1560_s12, 512  }
 0x537   : > { %2146 = vsyncadd (%p1898_p6), %s1560_s12, 4294966784  ;;  %s29_s22 = sadd.s32 1, %s2169_s22   ;;  %s2627_s13 = sld [smem:[#allocation20_spill]] }
 0x538   : > { %p26_p9 = scmp.ge.s32.totalorder %s29_s22, 4   ;;  %s2628_s17 = smov %s2153_s18 }
 0x539   : > { %s2629_s18 = smov %s2157_s19  ;;  %s2630_s19 = smov %s2359_s14 }
 0x53a   : > { %s2631_s20 = smov %s2165_s21  ;;  %28 = sbr.rel (!%p26_p9) target bundleno = 13 (0xd), region = 132 }
 0x53d   : > { %s2632_s21 = smov %s2627_s13 }
 0x53f   :  { %1565 = vsyncpa [#allocation6], 1 }
 0x540   :  { %1567 = vsyncpa [#allocation6 + $0x1], 1 }
 0x541   :  { %1568 = vsyncpa [#allocation9], 1 }
 0x542   :  { %1569 = vsyncpa [#allocation12], 1 }
 0x543   :  { %1570 = vsyncpa [#allocation7], 1 }
 0x544   :  { %1572 = vsyncpa [#allocation7 + $0x1], 1 }

</bundles_post_ra>
